<compile_context>
chip_gen: v7x
topology: tpu7x:2x2x1
jax: 0.10.0
libtpu: 0.0.40
codegen_flags: <defaults>
</compile_context>

<pallas_src>
import jax
import jax.numpy as jnp
from jax.experimental import pallas as pl
from jax.experimental.pallas import tpu as pltpu


def _round_up(x, m):
    return ((x + m - 1) // m) * m


def _cdiv(a, b):
    return (a + b - 1) // b


def _pick_tile(total, want, mult):
    """Largest multiple of `mult` that divides `total` and is <= max(want, mult).

    Precondition: total % mult == 0 and total >= mult.
    """
    want = max(mult, (min(int(want), int(total)) // mult) * mult)
    d = want
    while d > mult:
        if total % d == 0:
            return d
        d -= mult
    return mult


def _default_vmem_limit_bytes():
    """Generation-aware scoped-VMEM limit: headroom on 64 MiB parts (v7x),
    most of the capacity on 128 MiB parts (v5e/v6e)."""
    cap = 128 * 1024 * 1024
    try:
        cap = int(pltpu.get_tpu_info().vmem_capacity_bytes)
    except Exception:
        pass
    if cap <= 64 * 1024 * 1024:
        return 40 * 1024 * 1024
    return 96 * 1024 * 1024


def _mtlora_kernel(x_ref, xt_ref, wt_ref, bias_ref,
                   a_sh_ref, b_sh_ref, a_t_ref, b_t_ref,
                   out_main_ref, out_tasks_ref,
                   pre_scratch):
    """One (row tile, col tile, task) grid step.

    The task axis (axis 2) is innermost & sequential ("arbitrary"): pretrained +
    shared LoRA for this (row, col) tile are computed once at t == 0, pretrained is
    cached in pre_scratch and reused by every task step.  out_main's block index is
    constant across the task axis, so writing it only at t == 0 is safe (the block
    stays resident until the (row, col) tile changes).
    """
    t = pl.program_id(2)
    cdtype = wt_ref.dtype

    @pl.when(t == 0)
    def _():
        x = x_ref[...].astype(cdtype)               # per-tile cast: free under the MXU
        pre = jnp.dot(x, wt_ref[...],
                      preferred_element_type=jnp.float32) + bias_ref[...]
        pre_scratch[...] = pre.astype(pre_scratch.dtype)
        xa = jnp.dot(x, a_sh_ref[...], preferred_element_type=jnp.float32)
        shared = jnp.dot(xa.astype(cdtype), b_sh_ref[...],
                         preferred_element_type=jnp.float32)
        # shared_scale already folded into b_sh in prepare_mtlora_params().
        out_main_ref[...] = (pre + shared).astype(out_main_ref.dtype)

    # Task-specific LoRA branch (task_scale already folded into b_t).
    xt = xt_ref[...].astype(cdtype)                                         # (TM, In)
    xa_t = jnp.dot(xt, a_t_ref[...], preferred_element_type=jnp.float32)    # (TM, RtP)
    lora_t = jnp.dot(xa_t.astype(cdtype), b_t_ref[...],
                     preferred_element_type=jnp.float32)                    # (TM, TN)
    out_tasks_ref[...] = (pre_scratch[...].astype(jnp.float32)
                          + lora_t).astype(out_tasks_ref.dtype)


def prepare_mtlora_params(w, b, a_shared, b_shared, a_tasks, b_tasks,
                          shared_scale, task_scales, compute_dtype=None):
    """One-time parameter prep: transpose, fold scales, pad Out->128, rank->sublane.

    w: [Out, In]; b: [Out]; a_shared: [Rs, In]; b_shared: [Out, Rs];
    a_tasks: [T, Rt, In]; b_tasks: [T, Out, Rt].
    For production pass compute_dtype=jnp.bfloat16 (accumulation stays f32 in-kernel
    via preferred_element_type).
    """
    Out, In = w.shape
    T, Rt, _ = a_tasks.shape
    Rs = a_shared.shape[0]
    cdtype = jnp.dtype(compute_dtype) if compute_dtype is not None else jnp.dtype(w.dtype)
    sub = 16 if cdtype == jnp.dtype(jnp.bfloat16) else 8
    OutP = _round_up(Out, 128)
    RsP = _round_up(Rs, sub)
    RtP = _round_up(Rt, sub)

    def pad_to(arr, shape):
        pads = [(0, s - d) for s, d in zip(shape, arr.shape)]
        return jnp.pad(arr, pads)

    tscale = jnp.asarray(task_scales, jnp.float32).reshape(T, 1, 1)

    return {
        "wt": pad_to(w.T.astype(cdtype), (In, OutP)),
        "bias": pad_to(b.reshape(1, Out).astype(jnp.float32), (1, OutP)),
        "a_sh_t": pad_to(a_shared.T.astype(cdtype), (In, RsP)),
        "b_sh_t": pad_to((b_shared.T * shared_scale).astype(cdtype), (RsP, OutP)),
        "a_t_t": pad_to(jnp.transpose(a_tasks, (0, 2, 1)).astype(cdtype), (T, In, RtP)),
        "b_t_t": pad_to((jnp.transpose(b_tasks, (0, 2, 1)) * tscale).astype(cdtype),
                        (T, RtP, OutP)),
        "out_features": Out,
        "compute_dtype": cdtype,
    }


def mtlora_forward(x, x_tasks, params, *, tm=256, tn=512, vmem_limit_bytes=None):
    """x: [B, S, In]; x_tasks: [T, B, S, In]; params from prepare_mtlora_params."""
    B, S, In = x.shape
    T = x_tasks.shape[0]
    wt, bias = params["wt"], params["bias"]
    a_sh_t, b_sh_t = params["a_sh_t"], params["b_sh_t"]
    a_t_t, b_t_t = params["a_t_t"], params["b_t_t"]
    Out = params["out_features"]
    cdtype = params["compute_dtype"]
    OutP = wt.shape[1]
    RsP = a_sh_t.shape[1]
    RtP = a_t_t.shape[2]

    if vmem_limit_bytes is None:
        vmem_limit_bytes = _default_vmem_limit_bytes()

    out_dtype = x.dtype
    # Keep the pretrained cache in bf16 when the output is bf16: it is re-read once
    # per task step, so halving its width halves the epilogue vld traffic.
    acc_dtype = (jnp.bfloat16 if jnp.dtype(out_dtype) == jnp.dtype(jnp.bfloat16)
                 else jnp.float32)
    sub = 16 if jnp.dtype(cdtype) == jnp.dtype(jnp.bfloat16) else 8
    lane_mult = 256 if (jnp.dtype(cdtype) == jnp.dtype(jnp.bfloat16)
                        and OutP % 256 == 0) else 128

    N = B * S
    xf = x.reshape(N, In)              # metadata-only reshape; dtype cast is in-kernel
    xtf = x_tasks.reshape(T, N, In)

    # ---- Row tiling: sublane-aligned, prefer a TM that divides N (no padding copy),
    #      and >= 2 row tiles so both v7x TensorCores get work on the parallel axis.
    tm = max(sub, (int(tm) // sub) * sub)
    if N % sub == 0:
        TM = _pick_tile(N, tm, sub)
        if N // TM < 2 and N >= 2 * sub:
            TM = _pick_tile(N, _cdiv(N, 2), sub)
        NP = N
    else:
        TM = min(tm, _round_up(N, sub))
        if _round_up(N, TM) // TM < 2 and N > sub:
            TM = max(sub, _round_up(_cdiv(N, 2), sub))
        NP = _round_up(N, TM)
    if NP != N:
        xf = jnp.pad(xf, ((0, NP - N), (0, 0)))
        xtf = jnp.pad(xtf, ((0, 0), (0, NP - N), (0, 0)))
    num_row_tiles = NP // TM

    # ---- Column (Out) tiling: lane-dense, 256-aligned for bf16 MXU when possible,
    #      auto-shrunk until the per-step VMEM estimate fits the limit.
    tn = max(lane_mult, (int(tn) // lane_mult) * lane_mult)
    TN = _pick_tile(OutP, tn, lane_mult)

    x_isz = jnp.dtype(x.dtype).itemsize
    xt_isz = jnp.dtype(x_tasks.dtype).itemsize
    c_isz = jnp.dtype(cdtype).itemsize
    o_isz = jnp.dtype(out_dtype).itemsize
    a_isz = jnp.dtype(acc_dtype).itemsize

    def vmem_est(tn_):
        return (2 * TM * In * (x_isz + xt_isz)            # x, x_tasks (double-buffered)
                + 2 * In * tn_ * c_isz                    # W.T
                + 2 * tn_ * 4                             # bias
                + 2 * In * (RsP + RtP) * c_isz            # A_shared / A_task
                + 2 * (RsP + RtP) * tn_ * c_isz           # B_shared / B_task
                + 4 * TM * tn_ * o_isz                    # out_main + out_tasks
                + TM * tn_ * a_isz)                       # pre_scratch

    while TN > lane_mult and vmem_est(TN) > int(0.8 * vmem_limit_bytes):
        TN = _pick_tile(OutP, TN - lane_mult, lane_mult)
    num_col_tiles = OutP // TN

    # Advisory cost estimate (shared/task A-projections are recomputed per col tile).
    flops = (2 * NP * In * OutP
             + num_col_tiles * 2 * NP * In * RsP + 2 * NP * RsP * OutP
             + T * (num_col_tiles * 2 * NP * In * RtP + 2 * NP * RtP * OutP))
    bytes_accessed = (
        NP * In * x_isz
        + num_col_tiles * T * NP * In * xt_isz
        + num_row_tiles * (In * OutP + In * RsP + RsP * OutP
                           + T * (In * RtP + RtP * OutP)) * c_isz
        + OutP * 4
        + (NP * OutP + T * NP * OutP) * o_isz)
    cost = pl.CostEstimate(flops=int(flops), transcendentals=0,
                           bytes_accessed=int(bytes_accessed))

    grid_spec = pltpu.PrefetchScalarGridSpec(
        num_scalar_prefetch=0,
        grid=(num_row_tiles, num_col_tiles, T),
        in_specs=[
            pl.BlockSpec((TM, In), lambda i, j, t: (i, 0)),                     # x
            pl.BlockSpec((pl.Squeezed(), TM, In), lambda i, j, t: (t, i, 0)),   # x_tasks
            pl.BlockSpec((In, TN), lambda i, j, t: (0, j)),                     # W.T
            pl.BlockSpec((1, TN), lambda i, j, t: (0, j)),                      # bias
            pl.BlockSpec((In, RsP), lambda i, j, t: (0, 0)),                    # A_shared.T
            pl.BlockSpec((RsP, TN), lambda i, j, t: (0, j)),                    # B_shared.T*s
            pl.BlockSpec((pl.Squeezed(), In, RtP), lambda i, j, t: (t, 0, 0)),  # A_task.T
            pl.BlockSpec((pl.Squeezed(), RtP, TN), lambda i, j, t: (t, 0, j)),  # B_task.T*s
        ],
        out_specs=[
            pl.BlockSpec((TM, TN), lambda i, j, t: (i, j)),                     # main out
            pl.BlockSpec((pl.Squeezed(), TM, TN), lambda i, j, t: (t, i, j)),   # task out
        ],
        scratch_shapes=[pltpu.VMEM((TM, TN), acc_dtype)],      # pretrained cache
    )

    out_main, out_tasks = pl.pallas_call(
        _mtlora_kernel,
        out_shape=(jax.ShapeDtypeStruct((NP, OutP), out_dtype),
                   jax.ShapeDtypeStruct((T, NP, OutP), out_dtype)),
        grid_spec=grid_spec,
        compiler_params=pltpu.CompilerParams(
            # Task axis MUST stay innermost & sequential (pre_scratch / out_main
            # residency); row axis "parallel" feeds both v7x TensorCores.
            dimension_semantics=("parallel", "arbitrary", "arbitrary"),
            vmem_limit_bytes=int(vmem_limit_bytes)),
        cost_estimate=cost,
    )(xf, xtf, wt, bias, a_sh_t, b_sh_t, a_t_t, b_t_t)

    out_main = out_main[:N, :Out].reshape(B, S, Out)
    out_tasks = out_tasks[:, :N, :Out].reshape(T, B, S, Out)
    return out_main, out_tasks


def reference(x, x_tasks, w, b, a_shared, b_shared, a_tasks, b_tasks,
              shared_scale, task_scales):
    pre = x @ w.T + b
    main = pre + (x @ a_shared.T @ b_shared.T) * shared_scale
    task_outs = [pre + (x_tasks[i] @ a_tasks[i].T @ b_tasks[i].T) * task_scales[i]
                 for i in range(a_tasks.shape[0])]
    return main, jnp.stack(task_outs, axis=0)


if __name__ == "__main__":
    # Small shapes; N = 48 exercises multiple row tiles via the >=2-tile logic.
    B, S, In, Out, Rs, Rt, T = 2, 24, 32, 32, 4, 4, 2
    key = jax.random.PRNGKey(0)
    ks = jax.random.split(key, 8)

    x = jax.random.normal(ks[0], (B, S, In), jnp.float32)
    x_tasks = jax.random.normal(ks[1], (T, B, S, In), jnp.float32)
    w = jax.random.normal(ks[2], (Out, In), jnp.float32) * 0.1
    b = jax.random.normal(ks[3], (Out,), jnp.float32) * 0.1
    a_shared = jax.random.normal(ks[4], (Rs, In), jnp.float32) * 0.1
    # NOTE: the PyTorch module zero-inits B matrices; non-zero values here to
    # actually exercise the LoRA matmuls (forward semantics unchanged).
    b_shared = jax.random.normal(ks[5], (Out, Rs), jnp.float32) * 0.1
    a_tasks = jax.random.normal(ks[6], (T, Rt, In), jnp.float32) * 0.1
    b_tasks = jax.random.normal(ks[7], (T, Out, Rt), jnp.float32) * 0.1
    shared_scale = 0.5
    task_scales = [0.75, 1.25]

    params = prepare_mtlora_params(w, b, a_shared, b_shared, a_tasks, b_tasks,
                                   shared_scale, task_scales)
    out_main, out_tasks = mtlora_forward(x, x_tasks, params)
    jax.block_until_ready((out_main, out_tasks))

    ref_main, ref_tasks = reference(x.reshape(-1, In),
                                    x_tasks.reshape(T, -1, In),
                                    w, b, a_shared, b_shared, a_tasks, b_tasks,
                                    shared_scale, jnp.asarray(task_scales))
    ref_main = ref_main.reshape(B, S, Out)
    ref_tasks = ref_tasks.reshape(T, B, S, Out)

    assert jnp.allclose(out_main, ref_main, atol=1e-5, rtol=1e-5), "main output mismatch"
    assert jnp.allclose(out_tasks, ref_tasks, atol=1e-5, rtol=1e-5), "task outputs mismatch"

    print("KERNEL_OK")
</pallas_src>

<mosaic_0001>
module attributes {stable_mosaic.version = 11 : i64} {
  func.func @_mtlora_kernel(%arg0: i32, %arg1: i32, %arg2: i32, %arg3: memref<24x32xf32, #tpu.memory_space<vmem>>, %arg4: memref<1x24x32xf32, #tpu.memory_space<vmem>>, %arg5: memref<32x128xf32, #tpu.memory_space<vmem>>, %arg6: memref<1x128xf32, #tpu.memory_space<vmem>>, %arg7: memref<32x8xf32, #tpu.memory_space<vmem>>, %arg8: memref<8x128xf32, #tpu.memory_space<vmem>>, %arg9: memref<1x32x8xf32, #tpu.memory_space<vmem>>, %arg10: memref<1x8x128xf32, #tpu.memory_space<vmem>>, %arg11: memref<24x128xf32, #tpu.memory_space<vmem>>, %arg12: memref<1x24x128xf32, #tpu.memory_space<vmem>>, %arg13: memref<24x128xf32, #tpu.memory_space<vmem>>) attributes {dimension_semantics = [#tpu.dimension_semantics<parallel>, #tpu.dimension_semantics<arbitrary>, #tpu.dimension_semantics<arbitrary>], iteration_bounds = array<i64: 2, 1, 2>, scalar_prefetch = 0 : i64, scratch_operands = 1 : i64, tpu.core_type = #tpu.core_type<tc>, window_params = [{transform_indices = @transform_0, window_bounds = array<i64: 24, 32>}, {transform_indices = @transform_1, window_bounds = array<i64: 1, 24, 32>}, {transform_indices = @transform_2, window_bounds = array<i64: 32, 128>}, {transform_indices = @transform_3, window_bounds = array<i64: 1, 128>}, {pipeline_mode = #tpu.pipeline_mode<synchronous>, transform_indices = @transform_4, window_bounds = array<i64: 32, 8>}, {transform_indices = @transform_5, window_bounds = array<i64: 8, 128>}, {transform_indices = @transform_6, window_bounds = array<i64: 1, 32, 8>}, {transform_indices = @transform_7, window_bounds = array<i64: 1, 8, 128>}, {transform_indices = @transform_8, window_bounds = array<i64: 24, 128>}, {transform_indices = @transform_9, window_bounds = array<i64: 1, 24, 128>}]} {
    %c0_i32 = arith.constant 0 : i32
    %0 = arith.cmpi eq, %arg2, %c0_i32 : i32
    %1 = arith.extui %0 : i1 to i32
    %c0_i32_0 = arith.constant 0 : i32
    %2 = arith.cmpi ne, %1, %c0_i32_0 : i32
    scf.if %2 {
      %c0_15 = arith.constant 0 : index
      %c0_16 = arith.constant 0 : index
      %16 = vector.load %arg3[%c0_15, %c0_16] : memref<24x32xf32, #tpu.memory_space<vmem>>, vector<24x32xf32>
      %c0_17 = arith.constant 0 : index
      %c0_18 = arith.constant 0 : index
      %17 = vector.load %arg5[%c0_17, %c0_18] : memref<32x128xf32, #tpu.memory_space<vmem>>, vector<32x128xf32>
      %cst_19 = arith.constant dense<0.000000e+00> : vector<24x128xf32>
      %18 = tpu.matmul %16, %17, %cst_19 {dimension_numbers = #tpu.dot_dimension_numbers<[1], [0], [0], [1], [0, 0, 1, 1], [], []>} : vector<24x32xf32>, vector<32x128xf32>, vector<24x128xf32> -> vector<24x128xf32>
      %c0_20 = arith.constant 0 : index
      %c0_21 = arith.constant 0 : index
      %19 = vector.load %arg6[%c0_20, %c0_21] : memref<1x128xf32, #tpu.memory_space<vmem>>, vector<1x128xf32>
      %20 = vector.broadcast %19 : vector<1x128xf32> to vector<24x128xf32>
      %21 = arith.addf %18, %20 : vector<24x128xf32>
      %c0_22 = arith.constant 0 : index
      %c0_23 = arith.constant 0 : index
      %22 = vector.load %arg13[%c0_22, %c0_23] : memref<24x128xf32, #tpu.memory_space<vmem>>, vector<24x128xf32>
      tpu.vector_store %arg13[%c0_22, %c0_23], %21 {strides = array<i32>} : memref<24x128xf32, #tpu.memory_space<vmem>>, vector<24x128xf32>,
      %c0_24 = arith.constant 0 : index
      %c0_25 = arith.constant 0 : index
      %23 = vector.load %arg7[%c0_24, %c0_25] : memref<32x8xf32, #tpu.memory_space<vmem>>, vector<32x8xf32>
      %cst_26 = arith.constant dense<0.000000e+00> : vector<24x8xf32>
      %24 = tpu.matmul %16, %23, %cst_26 {dimension_numbers = #tpu.dot_dimension_numbers<[1], [0], [0], [1], [0, 0, 1, 1], [], []>} : vector<24x32xf32>, vector<32x8xf32>, vector<24x8xf32> -> vector<24x8xf32>
      %c0_27 = arith.constant 0 : index
      %c0_28 = arith.constant 0 : index
      %25 = vector.load %arg8[%c0_27, %c0_28] : memref<8x128xf32, #tpu.memory_space<vmem>>, vector<8x128xf32>
      %cst_29 = arith.constant dense<0.000000e+00> : vector<24x128xf32>
      %26 = tpu.matmul %24, %25, %cst_29 {dimension_numbers = #tpu.dot_dimension_numbers<[1], [0], [0], [1], [0, 0, 1, 1], [], []>} : vector<24x8xf32>, vector<8x128xf32>, vector<24x128xf32> -> vector<24x128xf32>
      %27 = arith.addf %21, %26 : vector<24x128xf32>
      %c0_30 = arith.constant 0 : index
      %c0_31 = arith.constant 0 : index
      %28 = vector.load %arg11[%c0_30, %c0_31] : memref<24x128xf32, #tpu.memory_space<vmem>>, vector<24x128xf32>
      tpu.vector_store %arg11[%c0_30, %c0_31], %27 {strides = array<i32>} : memref<24x128xf32, #tpu.memory_space<vmem>>, vector<24x128xf32>,
    } else {
    }
    %c0 = arith.constant 0 : index
    %c0_1 = arith.constant 0 : index
    %c0_2 = arith.constant 0 : index
    %3 = vector.load %arg4[%c0, %c0_1, %c0_2] : memref<1x24x32xf32, #tpu.memory_space<vmem>>, vector<1x24x32xf32>
    %4 = vector.shape_cast %3 : vector<1x24x32xf32> to vector<24x32xf32>
    %c0_3 = arith.constant 0 : index
    %c0_4 = arith.constant 0 : index
    %c0_5 = arith.constant 0 : index
    %5 = vector.load %arg9[%c0_3, %c0_4, %c0_5] : memref<1x32x8xf32, #tpu.memory_space<vmem>>, vector<1x32x8xf32>
    %6 = vector.shape_cast %5 : vector<1x32x8xf32> to vector<32x8xf32>
    %cst = arith.constant dense<0.000000e+00> : vector<24x8xf32>
    %7 = tpu.matmul %4, %6, %cst {dimension_numbers = #tpu.dot_dimension_numbers<[1], [0], [0], [1], [0, 0, 1, 1], [], []>} : vector<24x32xf32>, vector<32x8xf32>, vector<24x8xf32> -> vector<24x8xf32>
    %c0_6 = arith.constant 0 : index
    %c0_7 = arith.constant 0 : index
    %c0_8 = arith.constant 0 : index
    %8 = vector.load %arg10[%c0_6, %c0_7, %c0_8] : memref<1x8x128xf32, #tpu.memory_space<vmem>>, vector<1x8x128xf32>
    %9 = vector.shape_cast %8 : vector<1x8x128xf32> to vector<8x128xf32>
    %cst_9 = arith.constant dense<0.000000e+00> : vector<24x128xf32>
    %10 = tpu.matmul %7, %9, %cst_9 {dimension_numbers = #tpu.dot_dimension_numbers<[1], [0], [0], [1], [0, 0, 1, 1], [], []>} : vector<24x8xf32>, vector<8x128xf32>, vector<24x128xf32> -> vector<24x128xf32>
    %c0_10 = arith.constant 0 : index
    %c0_11 = arith.constant 0 : index
    %11 = vector.load %arg13[%c0_10, %c0_11] : memref<24x128xf32, #tpu.memory_space<vmem>>, vector<24x128xf32>
    %12 = arith.addf %11, %10 : vector<24x128xf32>
    %c0_12 = arith.constant 0 : index
    %c0_13 = arith.constant 0 : index
    %c0_14 = arith.constant 0 : index
    %13 = vector.load %arg12[%c0_12, %c0_13, %c0_14] : memref<1x24x128xf32, #tpu.memory_space<vmem>>, vector<1x24x128xf32>
    %14 = vector.shape_cast %13 : vector<1x24x128xf32> to vector<24x128xf32>
    %15 = vector.shape_cast %12 : vector<24x128xf32> to vector<1x24x128xf32>
    tpu.vector_store %arg12[%c0_12, %c0_13, %c0_14], %15 {strides = array<i32>} : memref<1x24x128xf32, #tpu.memory_space<vmem>>, vector<1x24x128xf32>,
    return
  }
  func.func @transform_0(%arg0: i32, %arg1: i32, %arg2: i32) -> (i32, i32) {
    %c0_i32 = arith.constant 0 : i32
    %c0_i32_0 = arith.constant 0 : i32
    return %arg0, %c0_i32 : i32, i32
  }
  func.func @transform_1(%arg0: i32, %arg1: i32, %arg2: i32) -> (i32, i32, i32) {
    %c0_i32 = arith.constant 0 : i32
    %c0_i32_0 = arith.constant 0 : i32
    return %arg2, %arg0, %c0_i32 : i32, i32, i32
  }
  func.func @transform_2(%arg0: i32, %arg1: i32, %arg2: i32) -> (i32, i32) {
    %c0_i32 = arith.constant 0 : i32
    %c0_i32_0 = arith.constant 0 : i32
    return %c0_i32, %arg1 : i32, i32
  }
  func.func @transform_3(%arg0: i32, %arg1: i32, %arg2: i32) -> (i32, i32) {
    %c0_i32 = arith.constant 0 : i32
    %c0_i32_0 = arith.constant 0 : i32
    return %c0_i32, %arg1 : i32, i32
  }
  func.func @transform_4(%arg0: i32, %arg1: i32, %arg2: i32) -> (i32, i32) {
    %c0_i32 = arith.constant 0 : i32
    %c0_i32_0 = arith.constant 0 : i32
    %c0_i32_1 = arith.constant 0 : i32
    return %c0_i32, %c0_i32_0 : i32, i32
  }
  func.func @transform_5(%arg0: i32, %arg1: i32, %arg2: i32) -> (i32, i32) {
    %c0_i32 = arith.constant 0 : i32
    %c0_i32_0 = arith.constant 0 : i32
    return %c0_i32, %arg1 : i32, i32
  }
  func.func @transform_6(%arg0: i32, %arg1: i32, %arg2: i32) -> (i32, i32, i32) {
    %c0_i32 = arith.constant 0 : i32
    %c0_i32_0 = arith.constant 0 : i32
    %c0_i32_1 = arith.constant 0 : i32
    return %arg2, %c0_i32, %c0_i32_0 : i32, i32, i32
  }
  func.func @transform_7(%arg0: i32, %arg1: i32, %arg2: i32) -> (i32, i32, i32) {
    %c0_i32 = arith.constant 0 : i32
    %c0_i32_0 = arith.constant 0 : i32
    return %arg2, %c0_i32, %arg1 : i32, i32, i32
  }
  func.func @transform_8(%arg0: i32, %arg1: i32, %arg2: i32) -> (i32, i32) {
    %c0_i32 = arith.constant 0 : i32
    return %arg0, %arg1 : i32, i32
  }
  func.func @transform_9(%arg0: i32, %arg1: i32, %arg2: i32) -> (i32, i32, i32) {
    %c0_i32 = arith.constant 0 : i32
    return %arg2, %arg0, %arg1 : i32, i32, i32
  }
}

</mosaic_0001>

<bundles_post_ra>
// kernel: tpu_custom_call.1
= control target key start
LH: loop header
LB: loop body
LE: loop exit
PB: predicated region body
PF: predicated region fallthrough
CT: control target
= control target key end

     0   :  { %s2929_s0 = inlined_call_operand.hbm [shape: f32[48,32], index: 0, kind: input, shape index: {}]   ;;  %s2930_s1 = inlined_call_operand.hbm [shape: f32[2,48,32], index: 1, kind: input, shape index: {}]   ;;  %s2931_s2 = inlined_call_operand.hbm [shape: f32[32,128], index: 2, kind: input, shape index: {}]   ;;  %s2932_s3 = inlined_call_operand.hbm [shape: f32[1,128], index: 3, kind: input, shape index: {}]   ;;  %s2933_s4 = inlined_call_operand.hbm [shape: f32[32,8], index: 4, kind: input, shape index: {}]   ;;  %s2934_s5 = inlined_call_operand.hbm [shape: f32[8,128], index: 5, kind: input, shape index: {}]   ;;  %s2935_s6 = inlined_call_operand.hbm [shape: f32[2,32,8], index: 6, kind: input, shape index: {}]   ;;  %s2936_s7 = inlined_call_operand.hbm [shape: f32[2,8,128], index: 7, kind: input, shape index: {}]   ;;  %s2937_s8 = inlined_call_operand.hbm [shape: f32[48,128], index: 8, kind: output, shape index: {0}]   ;;  %s2938_s9 = inlined_call_operand.hbm [shape: f32[2,48,128], index: 9, kind: output, shape index: {1}]  }
   0x1   :  { %2977 = sst [smem:[#allocation46_spill]] %s2929_s0 }
   0x2   :  { %2978 = sst [smem:[#allocation47_spill]] %s2931_s2 }
   0x3   :  { %2979 = sst [smem:[#allocation48_spill]] %s2932_s3 }
   0x4   :  { %2980 = sst [smem:[#allocation49_spill]] %s2935_s6 }
   0x5   :  { %2981 = sst [smem:[#allocation50_spill]] %s2936_s7 }
   0x6   :  { %2982 = sst [smem:[#allocation51_spill]] %s2937_s8 }
   0x7   :  { %2983 = sst [smem:[#allocation52_spill]] %s2938_s9 }
   0x8   :  { %15 = vsyncpa [#allocation4], 0 }
   0x9   :  { %17 = vsyncpa [#allocation4 + $0x1], 0 }
   0xa   :  { %18 = vsyncpa [#allocation7], 0 }
   0xb   :  { %20 = vsyncpa [#allocation7 + $0x1], 0 }
   0xc   :  { %21 = vsyncpa [#allocation10], 0 }
   0xd   :  { %22 = vsyncpa [#allocation13], 0 }
   0xe   :  { %23 = vsyncpa [#allocation5], 0 }
   0xf   :  { %25 = vsyncpa [#allocation5 + $0x1], 0 }
  0x10   :  { %26 = vsyncpa [#allocation18], 0 }
  0x11   :  { %28 = vsyncpa [#allocation18 + $0x1], 0  ;;  %s2227_s30 = smov 0   ;;  %s2229_s10 = smov 0  }
  0x12   :  { %s2231_s11 = smov 0   ;;  %s2233_s12 = smov 0  }
  0x13   :  { %s2235_s13 = smov 0   ;;  %s2237_s14 = smov 0  }
  0x14   :  { %s2239_s15 = smov 0   ;;  %s2241_s16 = smov 0  }
  0x15   :  { %s2243_s17 = smov 0   ;;  %s2245_s18 = smov 0  }
  0x16   :  { %s2247_s19 = smov 0   ;;  %s2249_s20 = smov 0  }
  0x17   :  { %s2251_s21 = smov 0   ;;  %s2253_s22 = smov 0  }
  0x18 LB: > { %2984 = sst [smem:[#allocation28_spill]] %s2103_s30  ;;  %s2298_s23 = sadd.s32 4294967295, %s2155_s22   ;;  %s2155_s22 = sphi %s2253_s22, %s34_s22   ;;  %s2151_s21 = sphi %s2251_s21, %s3081_s21   ;;  %s2147_s20 = sphi %s2249_s20, %s3090_s20   ;;  %s2143_s19 = sphi %s2247_s19, %s3079_s19   ;;  %s2139_s18 = sphi %s2245_s18, %s3089_s18   ;;  %s2135_s17 = sphi %s2243_s17, %s3088_s17   ;;  %s2131_s16 = sphi %s2241_s16, %s3087_s16   ;;  %s2127_s15 = sphi %s2239_s15, %s3086_s15   ;;  %s2123_s14 = sphi %s2237_s14, %s3076_s14   ;;  %s2119_s13 = sphi %s2235_s13, %s3085_s13   ;;  %s2115_s12 = sphi %s2233_s12, %s3084_s12   ;;  %s2111_s11 = sphi %s2231_s11, %s3083_s11   ;;  %s2107_s10 = sphi %s2229_s10, %s3074_s10   ;;  %s2103_s30 = sphi %s2227_s30, %s3073_s30  }
  0x19   : > { %2985 = sst [smem:[#allocation29_spill]] %s2107_s10  ;;  %p1350_p0 = scmp.ge.s32.totalorder %s2155_s22, 1 }
  0x1a   : > { %2986 = sst [smem:[#allocation30_spill]] %s2111_s11  ;;  %p2944_p1 = scmp.eq.s32.totalorder %s2298_s23, 0 }
  0x1b   : > { %2987 = sst [smem:[#allocation31_spill]] %s2115_s12  ;;  %p323_p2 = scmp.lt.s32.totalorder %s2155_s22, 5 }
  0x1c   : > { %2988 = sst [smem:[#allocation32_spill]] %s2123_s14  ;;  %s2157_s25 = smov [#allocation8]  }
  0x1d   : > { %2989 = sst [smem:[#allocation33_spill]] %s2127_s15  ;;  %p2303_p3 = pnand %p1350_p0, %p323_p2 }
  0x1e   : > { %2990 = sst [smem:[#allocation34_spill]] %s2135_s17  ;;  %s337_s26 = sshll.u32 %s2157_s25, 4  ;;  %s338_s26 = int_to_ptr.vmem [resolvable:$true] %s337_s26 }
  0x1f   : > { %2991 = sst [smem:[#allocation35_spill]] %s2139_s18  ;;  %p1552_p4 = pneg %p2303_p3 }
  0x20   : > { %2992 = sst [smem:[#allocation36_spill]] %s2143_s19  ;;  %s2158_s28 = smov [#allocation9]  }
  0x21   : > { %2993 = sst [smem:[#allocation37_spill]] %s2151_s21  ;;  %p2311_p5 = pnand %p1552_p4, %p2944_p1 }
  0x22   : > { %s2994_s24 = scalar_select %p2303_p3, 1, 0 }
  0x23   : > { %s2996_s27 = scalar_select %p2311_p5, 1, 0 }
  0x24   : > { %2995 = sst [smem:[#allocation38_spill]] %s2994_s24  ;;  %s353_s29 = sshll.u32 %s2158_s28, 4  ;;  %s2315_s29 = int_to_ptr.vmem [resolvable:$true] %s353_s29 }
  0x25   : > { %s2997_s2 = sld [smem:[#allocation47_spill]]  ;;  %p2325_p7 = pneg %p2311_p5 }
  0x27   : > { %s2998_s25 = scalar_select %p2325_p7, 1, 0 }
  0x2b   : > { %s1721_s19 = scalar_lea.hbm %s2997_s2, 512 }
  0x2c   : > { %p1722_p6 = scmp.ne.s32.totalorder %s2997_s2, %s1721_s19  ;;  %p1728_p10 = scmp.lt.u32.totalorder %s1721_s19, %s2997_s2 }
  0x2e   : > { %p1724_p8 = pnand %p2325_p7, %p1722_p6 }
  0x30   : > { %p1725_p9 = pneg %p1724_p8 }
  0x32   : > { %p1730_p11 = pnand %p1728_p10, %p1725_p9 }
  0x34   : > { %1733 = shalt.err (!%p1730_p11)
}
  0x35   : > { %s1734_s8 = scalar_lea.vmem %s338_s26, 512  ;;  %p1742_p2 = scmp.lt.s32.totalorder %s338_s26, %s338_s26 }
  0x36   : > { %p1735_p12 = scmp.ne.s32.totalorder %s338_s26, %s1734_s8  ;;  %p1743_p4 = scmp.lt.s32.totalorder %s1734_s8, %s1734_s8 }
  0x38   : > { %p1737_p13 = pnand %p1735_p12, %p2325_p7  ;;  %p1744_p1 = por %p1743_p4, %p1742_p2 }
  0x3a   : > { %p1738_p0 = pneg %p1737_p13 }
  0x3c   : > { %p1745_p3 = pnand %p1744_p1, %p1738_p0 }
  0x3e   : > { %1748 = shalt.err (!%p1745_p3)
}
  0x3f   : > { %s2949_s7 = smov 128   ;;  %s2951_s9 = smov 8  }
  0x40   : > { %1555 = dma.hbm_to_vmem [thread:$0]  (!%p2311_p5), %s2997_s2, 512, %s338_s26, [#allocation7], %s2949_s7, %s2949_s7, %s2951_s9  }
  0x41   : > { %s2999_s3 = sld [smem:[#allocation48_spill]] }
  0x47   : > { %s1749_s6 = scalar_lea.hbm %s2999_s3, 16 }
  0x48   : > { %p1750_p1 = scmp.ne.s32.totalorder %s2999_s3, %s1749_s6  ;;  %p1756_p8 = scmp.lt.u32.totalorder %s1749_s6, %s2999_s3 }
  0x4a   : > { %p1752_p3 = pnand %p1750_p1, %p2325_p7 }
  0x4c   : > { %p1753_p6 = pneg %p1752_p3 }
  0x4e   : > { %p1758_p9 = pnand %p1756_p8, %p1753_p6 }
  0x50   : > { %1761 = shalt.err (!%p1758_p9)
}
  0x51   : > { %s1762_s26 = scalar_lea.vmem %s2315_s29, 16  ;;  %s1769_s30 = scalar_lea.vmem %s2315_s29, 32 }
  0x52   : > { %p1763_p10 = scmp.ne.s32.totalorder %s2315_s29, %s1762_s26  ;;  %p1770_p13 = scmp.lt.s32.totalorder %s2315_s29, %s2315_s29 }
  0x53   : > { %p1771_p0 = scmp.lt.s32.totalorder %s1769_s30, %s1762_s26 }
  0x54   : > { %p1765_p11 = pnand %p1763_p10, %p2325_p7 }
  0x55   : > { %p1772_p2 = por %p1771_p0, %p1770_p13 }
  0x56   : > { %p1766_p12 = pneg %p1765_p11 }
  0x58   : > { %p1773_p4 = pnand %p1772_p2, %p1766_p12 }
  0x5a   : > { %1776 = shalt.err (!%p1773_p4)
}
  0x5b   : > { %1558 = dma.hbm_to_vmem [thread:$0]  (!%p2311_p5), %s2999_s3, 16, %s2315_s29, [#allocation10]  }
  0x5c   : > { %s1349_s11 = sadd.s32 4294967294, %s2155_s22   ;;  %s46_s18 = sadd.s32 1, %s2147_s20 }
  0x5d   : > { %p47_p1 = scmp.ge.s32.totalorder %s46_s18, 2  ;;  %s53_s19 = sadd.s32 1, %s2151_s21 }
  0x5e   : > { %s60_s24 = sadd.s32 1, %s2135_s17  ;;  %p67_p3 = scmp.ne.s32.totalorder %s2135_s17, %s2131_s16 }
  0x5f   : > { %s3092_s18 = smov (%p47_p1, %s46_s18), 0  ;;  %s3094_s19 = smov (!%p47_p1, %s53_s19), %s2151_s21 }
  0x60   : > { %3000 = sst [smem:[#allocation39_spill]] %s3092_s18  ;;  %p2953_p6 = scmp.eq.s32.totalorder %s2155_s22, 0 }
  0x61   : > { %p73_p8 = scmp.ne.s32.totalorder %s2131_s16, %s2127_s15  ;;  %p55_p9 = scmp.ge.s32.totalorder %s3094_s19, 2 }
  0x62   : > { %s2382_s29 = ssub.s32 %s2147_s20, %s3092_s18  ;;  %p2389_p10 = por %p2953_p6, %p67_p3 }
  0x63   : > { %p3002_p11 = scmp.eq.s32.totalorder %s2298_s23, 0  ;;  %s3096_s19 = smov (%p55_p9, %s3094_s19), 0 }
  0x64   : > { %3004 = sst [smem:[#allocation40_spill]] %s3096_s19  ;;  %p2960_p0 = scmp.eq.s32.totalorder %s2298_s23, 3 }
  0x65   : > { %p2398_p12 = por %p3002_p11, %p73_p8  ;;  %s57_s26 = ssub.s32 %s2151_s21, %s3096_s19 }
  0x66   : > { %p2408_p2 = scmp.eq.s32.totalorder %s1349_s11, 3  ;;  %p58_p4 = scmp.eq.s32.totalorder %s57_s26, 0 }
  0x67   : > { %s3003_s8 = scalar_select %p2398_p12, 1, 0 }
  0x68   : > { %s3005_s30 = scalar_select %p2408_p2, 1, 0 }
  0x69   : > { %s85_s6 = sor.u32 %s2382_s29, %s57_s26  ;;  %p2422_p9 = por %p2960_p0, %p67_p3 }
  0x6a   : > { %p2413_p1 = scmp.eq.s32.totalorder %s85_s6, 0  ;;  %p2434_p11 = por %p2408_p2, %p73_p8 }
  0x6b   : > { %s3007_s7 = scalar_select %p2422_p9, 1, 0 }
  0x6c   : > { %s2427_s9 = scalar_select %p58_p4, %s2135_s17, %s60_s24  }
  0x6d   : > { %s3009_s11 = scalar_select %p2434_p11, 1, 0 }
  0x6e   : > { %3008 = sst [smem:[#allocation41_spill]] %s2427_s9  ;;  %p2959_p13 = scmp.lt.s32.totalorder %s2155_s22, 4 }
  0x6f   : > { %3010 = sst [smem:[#allocation42_spill]] %s3009_s11  ;;  %s392_s6 = sand.u32 1, %s2135_s17  }
  0x70   : > { %s1518_s2 = smul.u32 24, %s392_s6  ;;  %p2446_p6 = pnand %p2959_p13, %p2389_p10 }
  0x71   : > { %s1391_s3 = smul.u32 384, %s2151_s21  ;;  %s3012_s0 = sld [smem:[#allocation46_spill]] }
  0x72   : > { %s394_s26 = scalar_lea.vmem [#allocation3], %s1518_s2  ;;  %s3013_s28 = sand.u32 1, %s2155_s22  }
  0x73   : > { %s401_s6 = sshll.u32 %s394_s26, 4  ;;  %s2459_s17 = scalar_lea.sflag [#allocation4], %s3013_s28  ;;  %s2455_s6 = int_to_ptr.vmem [resolvable:$true] %s401_s6 }
  0x74   : > { %p1779_p8 = pneg %p2446_p6 }
  0x77   : > { %s2453_s9 = scalar_lea.hbm %s3012_s0, %s1391_s3  ;;  %s1782_s24 = scalar_lea.hbm %s3012_s0, 768 }
  0x78   : > { %s1777_s11 = scalar_lea.hbm %s2453_s9, 384  ;;  %p1783_p13 = scmp.lt.u32.totalorder %s2453_s9, %s3012_s0 }
  0x79   : > { %p1778_p3 = scmp.ne.s32.totalorder %s2453_s9, %s1777_s11  ;;  %p1784_p0 = scmp.lt.u32.totalorder %s1782_s24, %s1777_s11 }
  0x7a   : > { %p1786_p9 = scmp.lt.u32.totalorder %s1777_s11, %s2453_s9 }
  0x7b   : > { %p1780_p10 = pnand %p1779_p8, %p1778_p3  ;;  %p1785_p11 = por %p1784_p0, %p1783_p13 }
  0x7d   : > { %p1781_p4 = pneg %p1780_p10  ;;  %p1787_p12 = por %p1786_p9, %p1785_p11 }
  0x7f   : > { %p1788_p5 = pnand %p1787_p12, %p1781_p4 }
  0x81   : > { %1791 = shalt.err (!%p1788_p5)
}
  0x82   : > { %s1792_s26 = scalar_lea.vmem %s2455_s6, 384  ;;  %s2161_s28 = smov [#allocation3]  }
  0x83   : > { %p1793_p3 = scmp.ne.s32.totalorder %s2455_s6, %s1792_s26  ;;  %s1797_s3 = sshll.u32 %s2161_s28, 4  ;;  %s1798_s3 = int_to_ptr.vmem [resolvable:$false] %s1797_s3 }
  0x84   : > { %s1799_s15 = scalar_lea.vmem %s1798_s3, 768  ;;  %p1800_p2 = scmp.lt.s32.totalorder %s2455_s6, %s1798_s3 }
  0x85   : > { %p1795_p10 = pnand %p1793_p3, %p1779_p8  ;;  %p1801_p13 = scmp.lt.s32.totalorder %s1799_s15, %s1792_s26 }
  0x87   : > { %p1796_p7 = pneg %p1795_p10  ;;  %p1802_p0 = por %p1801_p13, %p1800_p2 }
  0x89   : > { %p1803_p9 = pnand %p1802_p0, %p1796_p7 }
  0x8b   : > { %1806 = shalt.err (!%p1803_p9)
}
  0x8c   : > { %s3014_s11 = smov 8   ;;  %s3015_s18 = smov 128  }
  0x8d   : > { %1568 = dma.hbm_to_vmem [thread:$0]  (!%p2446_p6), %s2453_s9, 384, %s2455_s6, %s2459_s17, %s3015_s18, %s3015_s18, %s3014_s11  }
  0x8e   : > { %s88_s19 = sadd.s32 1, %s2123_s14  ;;  %p95_p5 = scmp.ne.s32.totalorder %s2123_s14, %s2119_s13 }
  0x8f   : > { %s2496_s24 = scalar_select %p2413_p1, %s2123_s14, %s88_s19  }
  0x90   : > { %p3017_p7 = scmp.eq.s32.totalorder %s2155_s22, 0  ;;  %p101_p2 = scmp.ne.s32.totalorder %s2119_s13, %s2115_s12 }
  0x91   : > { %3016 = sst [smem:[#allocation43_spill]] %s2496_s24  ;;  %p3018_p11 = scmp.eq.s32.totalorder %s2298_s23, 3 }
  0x92   : > { %p97_p12 = por %p95_p5, %p3017_p7  ;;  %s413_s26 = sand.u32 1, %s2123_s14  }
  0x93   : > { %p2504_p8 = por %p3018_p11, %p95_p5  ;;  %p3021_p4 = scmp.eq.s32.totalorder %s2298_s23, 0 }
  0x94   : > { %p3023_p6 = scmp.ne.s32.totalorder %s3005_s30, 0  ;;  %s1519_s10 = smul.u32 24, %s413_s26 }
  0x95   : > { %s3019_s2 = scalar_select %p2504_p8, 1, 0 }
  0x96   : > { %p2511_p3 = por %p101_p2, %p3021_p4  ;;  %p2517_p10 = por %p3023_p6, %p101_p2 }
  0x97   : > { %3020 = sst [smem:[#allocation44_spill]] %s3019_s2  ;;  %p3026_p1 = scmp.lt.s32.totalorder %s2155_s22, 4 }
  0x98   : > { %s3022_s28 = scalar_select %p2511_p3, 1, 0 }
  0x99   : > { %s3024_s9 = scalar_select %p2517_p10, 1, 0 }
  0x9a   : > { %p2523_p13 = pnand %p3026_p1, %p97_p12  ;;  %s416_s3 = smul.u32 3, %s2151_s21 }
  0x9b   : > { %3025 = sst [smem:[#allocation45_spill]] %s3024_s9  ;;  %s1520_s15 = smul.u32 6, %s2147_s20 }
  0x9c   : > { %s415_s19 = scalar_lea.vmem [#allocation6], %s1519_s10  ;;  %s2162_s14 = smov [#allocation11]  }
  0x9d   : > { %s424_s0 = sshll.u32 %s415_s19, 4  ;;  %s421_s24 = sadd.s32 %s1520_s15, %s416_s3  ;;  %s2529_s0 = int_to_ptr.vmem [resolvable:$true] %s424_s0 }
  0x9e   : > { %s1357_s30 = sshll.u32 %s421_s24, 7  ;;  %s363_s12 = sshll.u32 %s2162_s14, 4  ;;  %s2536_s12 = int_to_ptr.vmem [resolvable:$true] %s363_s12 }
  0x9f   : > { %s2534_s26 = scalar_lea.hbm %s2930_s1, %s1357_s30  ;;  %s3028_s21 = sand.u32 1, %s2155_s22  }
  0xa0   : > { %s2540_s10 = scalar_lea.sflag [#allocation7], %s3028_s21  ;;  %s1807_s3 = scalar_lea.hbm %s2534_s26, 384 }
  0xa1   : > { %p1808_p0 = scmp.ne.s32.totalorder %s2534_s26, %s1807_s3  ;;  %p1809_p9 = pneg %p2523_p13 }
  0xa2   : > { %s1812_s2 = scalar_lea.hbm %s2930_s1, 1536  ;;  %p1813_p12 = scmp.lt.u32.totalorder %s2534_s26, %s2930_s1 }
  0xa3   : > { %p1810_p5 = pnand %p1809_p9, %p1808_p0  ;;  %p1814_p2 = scmp.lt.u32.totalorder %s1812_s2, %s1807_s3 }
  0xa4   : > { %p1816_p4 = scmp.lt.u32.totalorder %s1807_s3, %s2534_s26 }
  0xa5   : > { %p1811_p7 = pneg %p1810_p5  ;;  %p1815_p11 = por %p1814_p2, %p1813_p12 }
  0xa7   : > { %p1817_p6 = por %p1816_p4, %p1815_p11 }
  0xa9   : > { %p1818_p1 = pnand %p1817_p6, %p1811_p7 }
  0xab   : > { %1821 = shalt.err (!%p1818_p1)
}
  0xac   : > { %s1822_s21 = scalar_lea.vmem %s2529_s0, 384  ;;  %s2163_s19 = smov [#allocation6]  }
  0xad   : > { %p1823_p0 = scmp.ne.s32.totalorder %s2529_s0, %s1822_s21  ;;  %s1827_s30 = sshll.u32 %s2163_s19, 4  ;;  %s1828_s30 = int_to_ptr.vmem [resolvable:$false] %s1827_s30 }
  0xae   : > { %s1829_s14 = scalar_lea.vmem %s1828_s30, 768  ;;  %p1830_p8 = scmp.lt.s32.totalorder %s2529_s0, %s1828_s30 }
  0xaf   : > { %p1825_p5 = pnand %p1823_p0, %p1809_p9  ;;  %p1831_p12 = scmp.lt.s32.totalorder %s1829_s14, %s1822_s21 }
  0xb1   : > { %p1826_p10 = pneg %p1825_p5  ;;  %p1832_p2 = por %p1831_p12, %p1830_p8 }
  0xb3   : > { %p1833_p11 = pnand %p1832_p2, %p1826_p10 }
  0xb5   : > { %1836 = shalt.err (!%p1833_p11)
}
  0xb6   : > { %1571 = dma.hbm_to_vmem [thread:$0]  (!%p2523_p13), %s2534_s26, 384, %s2529_s0, %s2540_s10, %s3015_s18, %s3015_s18, %s3014_s11  }
  0xb7   : > { %s1837_s2 = scalar_lea.hbm %s2933_s4, 512  ;;  %p3029_p10 = scmp.ne.s32.totalorder %s2998_s25, 0 }
  0xb8   : > { %p1838_p8 = scmp.ne.s32.totalorder %s2933_s4, %s1837_s2  ;;  %p1844_p4 = scmp.lt.u32.totalorder %s1837_s2, %s2933_s4 }
  0xba   : > { %p1840_p9 = pnand %p1838_p8, %p3029_p10 }
  0xbc   : > { %p1841_p7 = pneg %p1840_p9 }
  0xbe   : > { %p1846_p6 = pnand %p1844_p4, %p1841_p7 }
  0xc0   : > { %1849 = shalt.err (!%p1846_p6)
}
  0xc1   : > { %s1850_s0 = scalar_lea.vmem %s2536_s12, 512  ;;  %p1858_p5 = scmp.lt.s32.totalorder %s2536_s12, %s2536_s12 }
  0xc2   : > { %p1851_p13 = scmp.ne.s32.totalorder %s2536_s12, %s1850_s0  ;;  %p1859_p12 = scmp.lt.s32.totalorder %s1850_s0, %s1850_s0 }
  0xc4   : > { %p1853_p1 = pnand %p1851_p13, %p3029_p10  ;;  %p1860_p2 = por %p1859_p12, %p1858_p5 }
  0xc6   : > { %p1854_p0 = pneg %p1853_p1 }
  0xc8   : > { %p1861_p11 = pnand %p1860_p2, %p1854_p0 }
  0xca   : > { %1864 = shalt.err (!%p1861_p11)
}
  0xcb   : > { %p3030_p8 = scmp.ne.s32.totalorder %s2996_s27, 0  ;;  %s2164_s30 = smov [#allocation12]  }
  0xcc   : > { %s379_s14 = sshll.u32 %s2164_s30, 4  ;;  %s1865_s2 = scalar_lea.hbm %s2934_s5, 128  ;;  %s380_s14 = int_to_ptr.vmem [resolvable:$true] %s379_s14 }
  0xcd   : > { %1561 = dma.hbm_to_vmem [thread:$0]  (!%p3030_p8), %s2933_s4, 512, %s2536_s12, [#allocation10], %s3015_s18, %s3015_s18, %s3014_s11  }
  0xce   : > { %p1866_p9 = scmp.ne.s32.totalorder %s2934_s5, %s1865_s2  ;;  %p1872_p6 = scmp.lt.u32.totalorder %s1865_s2, %s2934_s5 }
  0xd0   : > { %p1868_p7 = pnand %p1866_p9, %p3029_p10 }
  0xd2   : > { %p1869_p4 = pneg %p1868_p7 }
  0xd4   : > { %p1874_p13 = pnand %p1872_p6, %p1869_p4 }
  0xd6   : > { %1877 = shalt.err (!%p1874_p13)
}
  0xd7   : > { %s1878_s12 = scalar_lea.vmem %s380_s14, 128  ;;  %p1886_p12 = scmp.lt.s32.totalorder %s380_s14, %s380_s14 }
  0xd8   : > { %p1879_p1 = scmp.ne.s32.totalorder %s380_s14, %s1878_s12  ;;  %p1887_p2 = scmp.lt.s32.totalorder %s1878_s12, %s1878_s12 }
  0xda   : > { %p1881_p0 = pnand %p1879_p1, %p3029_p10  ;;  %p1888_p11 = por %p1887_p2, %p1886_p12 }
  0xdc   : > { %p1882_p5 = pneg %p1881_p0 }
  0xde   : > { %p1889_p3 = pnand %p1888_p11, %p1882_p5 }
  0xe0   : > { %1892 = shalt.err (!%p1889_p3)
}
  0xe1   : > { %s3031_s19 = sld [smem:[#allocation30_spill]]  ;;  %s3032_s30 = sld [smem:[#allocation29_spill]] }
  0xe2   : > { %s3033_s3 = sld [smem:[#allocation28_spill]]  ;;  %p3034_p3 = scmp.eq.s32.totalorder %s2382_s29, 0 }
  0xe3   : > { %1564 = dma.hbm_to_vmem [thread:$0]  (!%p3030_p8), %s2934_s5, 128, %s380_s14, [#allocation13]  }
  0xe4   : > { %s1392_s2 = sshll.u32 %s2147_s20, 9  ;;  %p3035_p7 = scmp.eq.s32.totalorder %s2155_s22, 0 }
  0xe5   : > { %p3036_p6 = scmp.eq.s32.totalorder %s2298_s23, 0  ;;  %s3038_s12 = sld [smem:[#allocation49_spill]] }
  0xe6   : > { %p3040_p8 = scmp.lt.s32.totalorder %s2155_s22, 4 }
  0xe7   : > { %s213_s25 = sadd.s32 1, %s3031_s19  ;;  %p220_p10 = scmp.ne.s32.totalorder %s3031_s19, %s3032_s30 }
  0xe8   : > { %s2619_s24 = scalar_select %p3034_p3, %s3031_s19, %s213_s25  }
  0xe9   : > { %p226_p9 = scmp.ne.s32.totalorder %s3032_s30, %s3033_s3  ;;  %s436_s27 = sand.u32 1, %s3031_s19  }
  0xea   : > { %p222_p4 = por %p220_p10, %p3035_p7  ;;  %s1358_s15 = sshll.u32 %s436_s27, 5 }
  0xeb   : > { %p2631_p13 = por %p226_p9, %p3036_p6  ;;  %s3039_s0 = smov %s3038_s12 }
  0xec   : > { %s2638_s14 = scalar_lea.hbm %s3038_s12, %s1392_s2  ;;  %p2642_p1 = pnand %p3040_p8, %p222_p4 }
  0xed   : > { %s3037_s9 = scalar_select %p2631_p13, 1, 0 }
  0xee   : > { %s438_s26 = scalar_lea.vmem [#allocation14], %s1358_s15  ;;  %s2646_s30 = sshll.u32 %s436_s27, 3 }
  0xef   : > { %s445_s19 = sshll.u32 %s438_s26, 4  ;;  %s1893_s3 = scalar_lea.hbm %s2638_s14, 512  ;;  %s2648_s19 = int_to_ptr.vmem [resolvable:$true] %s445_s19 }
  0xf0   : > { %p1894_p0 = scmp.ne.s32.totalorder %s2638_s14, %s1893_s3  ;;  %p1895_p5 = pneg %p2642_p1 }
  0xf1   : > { %s1898_s6 = scalar_lea.hbm %s3039_s0, 1024  ;;  %p1899_p11 = scmp.lt.u32.totalorder %s2638_s14, %s3039_s0 }
  0xf2   : > { %p1896_p12 = pnand %p1895_p5, %p1894_p0  ;;  %p1900_p3 = scmp.lt.u32.totalorder %s1898_s6, %s1893_s3 }
  0xf3   : > { %p1902_p9 = scmp.lt.u32.totalorder %s1893_s3, %s2638_s14 }
  0xf4   : > { %p1897_p2 = pneg %p1896_p12  ;;  %p1901_p10 = por %p1900_p3, %p1899_p11 }
  0xf6   : > { %p1903_p7 = por %p1902_p9, %p1901_p10 }
  0xf8   : > { %p1904_p4 = pnand %p1903_p7, %p1897_p2 }
  0xfa   : > { %1907 = shalt.err (!%p1904_p4)
}
  0xfb   : > { %s1908_s27 = scalar_lea.vmem %s2648_s19, 512  ;;  %s2165_s15 = smov [#allocation14]  }
  0xfc   : > { %p1909_p6 = scmp.ne.s32.totalorder %s2648_s19, %s1908_s27  ;;  %s1913_s26 = sshll.u32 %s2165_s15, 4  ;;  %s1914_s26 = int_to_ptr.vmem [resolvable:$false] %s1913_s26 }
  0xfd   : > { %s1915_s25 = scalar_lea.vmem %s1914_s26, 1024  ;;  %p1916_p12 = scmp.lt.s32.totalorder %s2648_s19, %s1914_s26 }
  0xfe   : > { %p1911_p8 = pnand %p1909_p6, %p1895_p5  ;;  %p1917_p11 = scmp.lt.s32.totalorder %s1915_s25, %s1908_s27 }
 0x100   : > { %p1912_p0 = pneg %p1911_p8  ;;  %p1918_p3 = por %p1917_p11, %p1916_p12 }
 0x102   : > { %p1919_p10 = pnand %p1918_p3, %p1912_p0 }
 0x104   : > { %1922 = shalt.err (!%p1919_p10)
}
 0x105   : > { %1574 = dma.hbm_to_vmem [thread:$0]  (!%p2642_p1), %s2638_s14, 512, %s2648_s19, %s2459_s17, %s3015_s18, %s3015_s18, %s3014_s11  }
 0x106   : > { %s1362_s3 = sshll.u32 %s2147_s20, 7  ;;  %s3042_s21 = sld [smem:[#allocation50_spill]] }
 0x107   : > { %s459_s27 = scalar_lea.vmem [#allocation15], %s2646_s30 }
 0x108   : > { %s467_s15 = sshll.u32 %s459_s27, 4  ;;  %s468_s15 = int_to_ptr.vmem [resolvable:$true] %s467_s15 }
 0x10c   : > { %s3043_s26 = smov %s3042_s21  ;;  %s2683_s12 = scalar_lea.hbm %s3042_s21, %s1362_s3 }
 0x10d   : > { %s1923_s25 = scalar_lea.hbm %s2683_s12, 128  ;;  %s1928_s18 = scalar_lea.hbm %s3043_s26, 256 }
 0x10e   : > { %p1924_p2 = scmp.ne.s32.totalorder %s2683_s12, %s1923_s25  ;;  %p1929_p4 = scmp.lt.u32.totalorder %s2683_s12, %s3043_s26 }
 0x10f   : > { %p1930_p6 = scmp.lt.u32.totalorder %s1928_s18, %s1923_s25  ;;  %p1932_p0 = scmp.lt.u32.totalorder %s1923_s25, %s2683_s12 }
 0x110   : > { %p1926_p9 = pnand %p1924_p2, %p1895_p5 }
 0x111   : > { %p1931_p8 = por %p1930_p6, %p1929_p4 }
 0x112   : > { %p1927_p7 = pneg %p1926_p9 }
 0x113   : > { %p1933_p12 = por %p1932_p0, %p1931_p8 }
 0x115   : > { %p1934_p11 = pnand %p1933_p12, %p1927_p7 }
 0x117   : > { %1937 = shalt.err (!%p1934_p11)
}
 0x118   : > { %s1938_s30 = scalar_lea.vmem %s468_s15, 128  ;;  %s2166_s3 = smov [#allocation15]  }
 0x119   : > { %p1939_p3 = scmp.ne.s32.totalorder %s468_s15, %s1938_s30  ;;  %s1943_s2 = sshll.u32 %s2166_s3, 4  ;;  %s1944_s2 = int_to_ptr.vmem [resolvable:$false] %s1943_s2 }
 0x11a   : > { %s1945_s6 = scalar_lea.vmem %s1944_s2, 256  ;;  %p1946_p9 = scmp.lt.s32.totalorder %s468_s15, %s1944_s2 }
 0x11b   : > { %p1941_p10 = pnand %p1939_p3, %p1895_p5  ;;  %p1947_p13 = scmp.lt.s32.totalorder %s1945_s6, %s1938_s30 }
 0x11d   : > { %p1942_p2 = pneg %p1941_p10  ;;  %p1948_p4 = por %p1947_p13, %p1946_p9 }
 0x11f   : > { %p1949_p6 = pnand %p1948_p4, %p1942_p2 }
 0x121   : > { %1952 = shalt.err (!%p1949_p6)
}
 0x122   : > { %1577 = dma.hbm_to_vmem [thread:$0]  (!%p2642_p1), %s2683_s12, 128, %s468_s15, %s2540_s10  }
 0x123   : > { %s3044_s21 = sld [smem:[#allocation38_spill]] }
 0x129   : > { %p3045_p7 = scmp.ne.s32.totalorder %s3044_s21, 0 }
 0x12a   : > { %s478_s27 = sand.u32 (!%p3045_p7), 1, %s2298_s23   ;;  %s480_s25 = sand.u32 (!%p3045_p7), 1, %s2131_s16  }
 0x12b   : > { %476 = sbr.rel (%p3045_p7) target bundleno = 1253 (0x4e5), region = 52  ;;  %s479_s11 = scalar_lea.sflag (!%p3045_p7), [#allocation4], %s478_s27 }
 0x12c   : > { %s1521_s17 = smul.u32 (!%p3045_p7), 24, %s480_s25  ;;  %p3046_p13 = scmp.ne.s32.totalorder (!%p3045_p7), %s3003_s8, 0 }
 0x12e   : > { %s2712_s18 = scalar_lea.vmem (!%p3045_p7), [#allocation3], %s1521_s17 }
 0x132   : > { %2066 = dma.done.wait (%p3046_p13), %s479_s11, 384  }
 0x133   : > { %2068 = vsyncadd (%p3046_p13), %s479_s11, 4294966912  ;;  %s489_s10 = sand.u32 1, %s2119_s13   ;;  %s488_s12 = scalar_lea.sflag [#allocation7], %s478_s27 }
 0x134   : > { %s1522_s29 = smul.u32 24, %s489_s10  ;;  %p3047_p1 = scmp.ne.s32.totalorder %s3022_s28, 0 }
 0x136   : > { %s2721_s15 = scalar_lea.vmem [#allocation6], %s1522_s29 }
 0x137   : > { %2070 = dma.done.wait (%p3047_p1), %s488_s12, 384  }
 0x138   : > { %2072 = vsyncadd (%p3047_p1), %s488_s12, 4294966912  ;;  %p3048_p5 = scmp.eq.s32.totalorder %s2298_s23, 0 }
 0x13a   : > { %2074 = dma.done.wait (%p3048_p5), [#allocation7], 512   ;;  %p3049_p8 = pmov %p3048_p5 }
 0x13b   : > { %p3050_p0 = pmov %p3048_p5 }
 0x13c   : > { %2076 = vsyncadd (%p3049_p8), [#allocation7], 4294966784 }
 0x13d   : > { %2078 = dma.done.wait (%p3050_p0), [#allocation10], 528   ;;  %p3051_p12 = pmov %p3050_p0 }
 0x13e   : > { %p3052_p11 = pmov %p3050_p0 }
 0x13f   : > { %2080 = vsyncadd (%p3051_p12), [#allocation10], 4294966768 }
 0x140   : > { %2082 = dma.done.wait (%p3052_p11), [#allocation13], 128   ;;  %p3053_p3 = pmov %p3050_p0 }
 0x141   : > { %s3054_s8 = sld [smem:[#allocation29_spill]]  ;;  %p3055_p10 = scmp.ne.s32.totalorder %s3037_s9, 0 }
 0x142   : > { %2084 = vsyncadd (%p3053_p3), [#allocation13], 4294967168 }
 0x147   : > { %s514_s28 = sand.u32 1, %s3054_s8  }
 0x148   : > { %s1368_s14 = sshll.u32 %s514_s28, 5 }
 0x149   : > { %s2740_s19 = scalar_lea.vmem [#allocation14], %s1368_s14 }
 0x14a   : > { %2086 = dma.done.wait (%p3055_p10), %s479_s11, 512  }
 0x14b   : > { %2088 = vsyncadd (%p3055_p10), %s479_s11, 4294966784  ;;  %s2746_s30 = sshll.u32 %s514_s28, 3 }
 0x14c   : > { %s525_s3 = scalar_lea.vmem [#allocation15], %s2746_s30 }
 0x14d   : > { %2090 = dma.done.wait (%p3055_p10), %s488_s12, 128  }
 0x14e   : > { %2092 = vsyncadd (%p3055_p10), %s488_s12, 4294967168  ;;  %s2753_s23 = scalar_lea.vmem [#allocation16], %s1521_s17  ;;  %s2755_s2 = scalar_lea.vmem [#allocation17], %s1522_s29 }
 0x14f   : > { %s3056_s6 = sld [smem:[#allocation35_spill]] }
 0x155   : > { %p1370_p2 = scmp.ne.s32.totalorder %s3056_s6, 0 }
 0x156   : > { %v591_v0 = vld [vmem:[#allocation8] sm:$0xff] (!%p1370_p2)  ;;  %v592_v1 = vld [vmem:[#allocation8 + $0x8] sm:$0xff] (!%p1370_p2)  ;;  %v593_v2 = vld [vmem:[#allocation8 + $0x10] sm:$0xff] (!%p1370_p2)  ;;  %v2167_v3 = vmov (!%p1370_p2), 0.0|0.0   ;;  %vm2168_vm0 = vmmov (!%p1370_p2), 0   ;;  %v2169_v6 = vmov (!%p1370_p2), 0.0  }
 0x157   : > { %587 = sbr.rel (%p1370_p2) target bundleno = 795 (0x31b), region = 88  ;;  %1514 = vmatprep.subr.bf16.mxu1 (!%p1370_p2), %v2167_v3  ;;  %v1497_v4 = vpack.c.bf16 (!%p1370_p2), %v592_v1, %v591_v0  ;;  %v594_v5 = vld [vmem:[#allocation8 + $0x18] sm:$0xff] (!%p1370_p2)  ;;  %1434 = vmatprep.mubr.msk.f32.mxu1 (!%p1370_p2), %vm2168_vm0, %v2169_v6  ;;  %v695_v8 = vld [vmem:[#allocation11] sm:$0xff] (!%p1370_p2)  ;;  %v696_v9 = vld [vmem:[#allocation11 + $0x8] sm:$0xff] (!%p1370_p2)  ;;  %vm602_vm1 = vcmask (!%p1370_p2), 261120   ;;  %vm780_vm2 = vcmask (!%p1370_p2), 64512  }
 0x158   : > { %1496 = vmatprep.subr.bf16.mxu0 (!%p1370_p2), %v2167_v3  ;;  %1431 = vmatprep.mubr.msk.f32.mxu0 (!%p1370_p2), %vm2168_vm0, %v2169_v6  ;;  %v1500_v7 = vpack.c.bf16 (!%p1370_p2), %v594_v5, %v593_v2  ;;  %v589_v10 = vld [vmem:[%s2712_s18 + $0x8] sm:$0xff] (!%p1370_p2)  ;;  %v1503_v11 = vpack.c.bf16 (!%p1370_p2), %v696_v9, %v695_v8  ;;  %v697_v12 = vld [vmem:[#allocation11 + $0x10] sm:$0xff] (!%p1370_p2) }
 0x159   : > { %1516 = vmatpush3.bf16.msra.mxu1 (!%p1370_p2), %v1497_v4  ;;  %1498 = vmatpush3.bf16.msra.mxu0 (!%p1370_p2), %v1497_v4  ;;  %v698_v13 = vld [vmem:[#allocation11 + $0x18] sm:$0xff] (!%p1370_p2)  ;;  %v590_v15 = vld [vmem:[%s2712_s18 + $0x10] sm:$0xff] (!%p1370_p2) }
 0x15a   : > { %1515 = vmatprep.subr.bf16.mxu1 (!%p1370_p2), %v2167_v3  ;;  %1499 = vmatprep.subr.bf16.mxu0 (!%p1370_p2), %v2167_v3  ;;  %v588_v14 = vld [vmem:[%s2712_s18] sm:$0xff] (!%p1370_p2)  ;;  %v1506_v16 = vpack.c.bf16 (!%p1370_p2), %v698_v13, %v697_v12 }
 0x15b   : > { %v779_v17 = vld [vmem:[#allocation12] sm:$0xff] (!%p1370_p2)  ;;  %v1371_v18 = vld [vmem:[#allocation9] ss:$0 sm:$0xff] (!%p1370_p2) }
 0x15d   : > { %1517 = vmatpush3.bf16.msra.mxu1 (!%p1370_p2), %v1500_v7  ;;  %1501 = vmatpush3.bf16.msra.mxu0 (!%p1370_p2), %v1500_v7 }
 0x15e   : > { %1502 = vmatprep.subr.bf16.mxu1 %v2167_v3  ;;  %1457 = vmatprep.subr.mxu0 %v2169_v6 }
 0x160   : > { %1435 = vmatmul.mubr.msk.f32.vlgmr.msra.gmra.mrb[0].mxu1 %vm602_vm1, %v589_v10  ;;  %1432 = vmatmul.mubr.msk.f32.vlgmr.msra.gmra.mrb[0].mxu0 %vm602_vm1, %v588_v14 }
 0x161   : > { %1504 = vmatpush3.bf16.msra.mxu1 %v1503_v11  ;;  %1437 = vmatprep.mubr.msk.f32.mxu1 %vm2168_vm0, %v2169_v6 }
 0x162   : > { %1505 = vmatprep.subr.bf16.mxu1 %v2167_v3  ;;  %1459 = vmatprep.mubr.msk.f32.mxu0 %vm2168_vm0, %v2169_v6 }
 0x163   : > { %1458 = vmatpush3.msra.mxu0 %v779_v17 }
 0x164   : > { %1438 = vmatmul.mubr.msk.f32.gmra.mrb[2].mxu1 %vm602_vm1, %v590_v15 }
 0x165   : > { %1507 = vmatpush3.bf16.msra.mxu1 %v1506_v16  ;;  %1448 = vmatprep.mubr.msk.f32.mxu1 %vm2168_vm0, %v2169_v6 }
 0x168   : > { %1449 = vmatmul.mubr.msk.f32.vlgmr.msra.gmra.mrb[4].mxu1 %vm602_vm1, %v588_v14 }
 0x169   : > { %1451 = vmatprep.mubr.msk.f32.mxu1 %vm2168_vm0, %v2169_v6 }
 0x16c   : > { %1452 = vmatmul.mubr.msk.f32.gmra.mrb[6].mxu1 %vm602_vm1, %v589_v10 }
 0x16d   : > { %1454 = vmatprep.mubr.msk.f32.mxu1 %vm2168_vm0, %v2169_v6 }
 0x170   : > { %1455 = vmatmul.mubr.msk.f32.gmra.mrb[8].mxu1 %vm602_vm1, %v590_v15 }
 0x233   : > { %v683_v19 = vpop.f32.mrb[0].mxu1  ;;  %v678_v20 = vpop.f32.mrb[0].mxu0 }
 0x234   : > { %v684_v21 = vadd.f32 %v1371_v18, %v683_v19  ;;  %v1436_v22 = vpop.f32.mrb[1].mxu1  ;;  %v679_v23 = vadd.f32 %v1371_v18, %v678_v20  ;;  %v1433_v24 = vpop.f32.mrb[1].mxu0 }
 0x236   : > { %693 = vst [vmem:[#allocation2 + $0x8] sm:$0xff] %v684_v21  ;;  %692 = vst [vmem:[#allocation2] sm:$0xff] %v679_v23 }
 0x237   : > { %v688_v25 = vpop.f32.mrb[2].mxu1 }
 0x238   : > { %v689_v26 = vadd.f32 %v1371_v18, %v688_v25  ;;  %v1439_v27 = vpop.f32.mrb[3].mxu1 }
 0x23a   : > { %694 = vst [vmem:[#allocation2 + $0x10] sm:$0xff] %v689_v26 }
 0x23b   : > { %v765_v28 = vpop.f32.mrb[4].mxu1 }
 0x23c   : > { %v1450_v29 = vpop.f32.mrb[5].mxu1  ;;  %1460 = vmatmul.mubr.msk.f32.vlgmr.msra.gmra.mrb[2].mxu0 %vm780_vm2, %v765_v28 }
 0x23d   : > { %1462 = vmatprep.mubr.msk.f32.mxu0 %vm2168_vm0, %v2169_v6 }
 0x23f   : > { %v770_v30 = vpop.f32.mrb[6].mxu1 }
 0x240   : > { %v1453_v31 = vpop.f32.mrb[7].mxu1  ;;  %1463 = vmatmul.mubr.msk.f32.gmra.mrb[4].mxu0 %vm780_vm2, %v770_v30 }
 0x241   : > { %1465 = vmatprep.mubr.msk.f32.mxu0 %vm2168_vm0, %v2169_v6 }
 0x243   : > { %v775_v32 = vpop.f32.mrb[8].mxu1 }
 0x244   : > { %v1456_v33 = vpop.f32.mrb[9].mxu1  ;;  %1466 = vmatmul.mubr.msk.f32.gmra.mrb[6].mxu0 %vm780_vm2, %v775_v32 }
 0x30f   : > { %v856_v34 = vpop.f32.mrb[2].mxu0 }
 0x310   : > { %v870_v35 = vadd.f32 %v856_v34, %v679_v23  ;;  %v1461_v36 = vpop.f32.mrb[3].mxu0 }
 0x312   : > { %873 = vst [vmem:[%s2753_s23] sm:$0xff] %v870_v35 }
 0x313   : > { %v861_v37 = vpop.f32.mrb[4].mxu0 }
 0x314   : > { %v871_v38 = vadd.f32 %v861_v37, %v684_v21  ;;  %v1464_v39 = vpop.f32.mrb[5].mxu0 }
 0x316   : > { %874 = vst [vmem:[%s2753_s23 + $0x8] sm:$0xff] %v871_v38 }
 0x317   : > { %v866_v40 = vpop.f32.mrb[6].mxu0 }
 0x318   : > { %v872_v41 = vadd.f32 %v866_v40, %v689_v26  ;;  %v1467_v42 = vpop.f32.mrb[7].mxu0 }
 0x31a   : > { %875 = vst [vmem:[%s2753_s23 + $0x10] sm:$0xff] %v872_v41 }
 0x31b PF: > { %v879_v43 = vld [vmem:[%s2740_s19] sm:$0xff]  ;;  %v880_v44 = vld [vmem:[%s2740_s19 + $0x8] sm:$0xff]  ;;  %v881_v45 = vld [vmem:[%s2740_s19 + $0x10] sm:$0xff]  ;;  %v2170_v46 = vmov 0.0|0.0   ;;  %vm2171_vm3 = vmmov 0   ;;  %v2172_v49 = vmov 0.0  }
 0x31c   : > { %1508 = vmatprep.subr.bf16.mxu0 %v2170_v46  ;;  %v1509_v47 = vpack.c.bf16 %v880_v44, %v879_v43  ;;  %v882_v48 = vld [vmem:[%s2740_s19 + $0x18] sm:$0xff]  ;;  %1476 = vmatprep.mubr.msk.f32.mxu0 %vm2171_vm3, %v2172_v49  ;;  %vm883_vm4 = vcmask 261120   ;;  %v877_v52 = vld [vmem:[%s2721_s15 + $0x8] sm:$0xff]  ;;  %s3057_s9 = sld [smem:[#allocation36_spill]]  ;;  %vm974_vm5 = vcmask 64512   ;;  %s1093_s27 = sshll.u32 %s2753_s23, 4  ;;  %s2801_s27 = int_to_ptr.vmem [resolvable:$true] %s1093_s27 }
 0x31d   : > { %1485 = vmatprep.subr.mxu1 %v2172_v49  ;;  %1487 = vmatprep.mubr.msk.f32.mxu1 %vm2171_vm3, %v2172_v49  ;;  %v1512_v50 = vpack.c.bf16 %v882_v48, %v881_v45  ;;  %v876_v51 = vld [vmem:[%s2721_s15] sm:$0xff]  ;;  %v878_v53 = vld [vmem:[%s2721_s15 + $0x10] sm:$0xff]  ;;  %s3058_s18 = sld [smem:[#allocation51_spill]]  ;;  %s2805_s15 = scalar_lea.sflag [#allocation5], %s480_s25 }
 0x31e   : > { %1510 = vmatpush3.bf16.msra.mxu0 %v1509_v47  ;;  %v973_v54 = vld [vmem:[%s525_s3] sm:$0xff]  ;;  %s1953_s8 = scalar_lea.vmem %s2801_s27, 384  ;;  %p3060_p4 = scmp.ne.s32.totalorder %s3007_s7, 0 }
 0x31f   : > { %1511 = vmatprep.subr.bf16.mxu0 %v2170_v46  ;;  %1486 = vmatpush3.msra.mxu1 %v973_v54  ;;  %p1954_p9 = scmp.ne.s32.totalorder %s2801_s27, %s1953_s8  ;;  %s2173_s28 = smov [#allocation16]  }
 0x320   : > { %s1957_s14 = sshll.u32 %s2173_s28, 4  ;;  %s1958_s14 = int_to_ptr.vmem [resolvable:$false] %s1957_s14 }
 0x321   : > { %p1955_p6 = pnand %p1954_p9, %p3060_p4  ;;  %s1959_s19 = scalar_lea.vmem %s1958_s14, 768 }
 0x322   : > { %1513 = vmatpush3.bf16.msra.mxu0 %v1512_v50  ;;  %s1393_s21 = smul.u32 384, %s3057_s9  ;;  %p1960_p13 = scmp.lt.s32.totalorder %s2801_s27, %s1958_s14 }
 0x323   : > { %s3059_s29 = smov %s3058_s18  ;;  %p1956_p7 = pneg %p1955_p6 }
 0x324   : > { %s2799_s12 = scalar_lea.hbm %s3058_s18, %s1393_s21  ;;  %p1961_p1 = scmp.lt.s32.totalorder %s1959_s19, %s1953_s8 }
 0x325   : > { %1477 = vmatmul.mubr.msk.f32.vlgmr.msra.gmra.mrb[0].mxu0 %vm883_vm4, %v876_v51 }
 0x326   : > { %1479 = vmatprep.mubr.msk.f32.mxu0 %vm2171_vm3, %v2172_v49  ;;  %p1962_p5 = por %p1961_p1, %p1960_p13 }
 0x328   : > { %p1963_p8 = pnand %p1962_p5, %p1956_p7 }
 0x329   : > { %1480 = vmatmul.mubr.msk.f32.gmra.mrb[2].mxu0 %vm883_vm4, %v877_v52 }
 0x32a   : > { %1482 = vmatprep.mubr.msk.f32.mxu0 %vm2171_vm3, %v2172_v49 }
 0x32d   : > { %1483 = vmatmul.mubr.msk.f32.gmra.mrb[4].mxu0 %vm883_vm4, %v878_v53 }
 0x3f8   : > { %v959_v55 = vpop.f32.mrb[0].mxu0 }
 0x3f9   : > { %v1478_v56 = vpop.f32.mrb[1].mxu0  ;;  %1488 = vmatmul.mubr.msk.f32.vlgmr.msra.gmra.mrb[0].mxu1 %vm974_vm5, %v959_v55 }
 0x3fa   : > { %1490 = vmatprep.mubr.msk.f32.mxu1 %vm2171_vm3, %v2172_v49 }
 0x3fc   : > { %v964_v57 = vpop.f32.mrb[2].mxu0 }
 0x3fd   : > { %v1481_v58 = vpop.f32.mrb[3].mxu0  ;;  %1491 = vmatmul.mubr.msk.f32.gmra.mrb[2].mxu1 %vm974_vm5, %v964_v57 }
 0x3fe   : > { %1493 = vmatprep.mubr.msk.f32.mxu1 %vm2171_vm3, %v2172_v49 }
 0x400   : > { %v969_v59 = vpop.f32.mrb[4].mxu0 }
 0x401   : > { %v1484_v60 = vpop.f32.mrb[5].mxu0  ;;  %1494 = vmatmul.mubr.msk.f32.gmra.mrb[4].mxu1 %vm974_vm5, %v969_v59 }
 0x402   : > { %1966 = shalt.err (!%p1963_p8)
}
 0x403   : > { %s1967_s25 = scalar_lea.hbm %s2799_s12, 384  ;;  %s1971_s23 = scalar_lea.hbm %s3059_s29, 768 }
 0x404   : > { %p1968_p0 = scmp.ne.s32.totalorder %s2799_s12, %s1967_s25  ;;  %p1972_p3 = scmp.lt.u32.totalorder %s2799_s12, %s3059_s29 }
 0x405   : > { %p1973_p10 = scmp.lt.u32.totalorder %s1971_s23, %s1967_s25  ;;  %p1975_p9 = scmp.lt.u32.totalorder %s1967_s25, %s2799_s12 }
 0x406   : > { %p1969_p12 = pnand %p1968_p0, %p3060_p4 }
 0x407   : > { %p1974_p2 = por %p1973_p10, %p1972_p3 }
 0x408   : > { %p1970_p11 = pneg %p1969_p12 }
 0x409   : > { %p1976_p6 = por %p1975_p9, %p1974_p2 }
 0x40b   : > { %p1977_p7 = pnand %p1976_p6, %p1970_p11 }
 0x40d   : > { %1980 = shalt.err (!%p1977_p7)
}
 0x40e   : > { %s2174_s17 = smov 128   ;;  %s3061_s11 = sld [smem:[#allocation35_spill]]  ;;  %v1064_v61 = vld [vmem:[#allocation2] sm:$0xff]  ;;  %v1065_v1 = vld [vmem:[#allocation2 + $0x8] sm:$0xff]  ;;  %v1066_v5 = vld [vmem:[#allocation2 + $0x10] sm:$0xff] }
 0x40f   : > { %s2175_s18 = smov 8   ;;  %s1103_s8 = smul.u32 3, %s3057_s9 }
 0x410   : > { %1548 = dma.vmem_to_hbm [thread:$0]  (%p3060_p4), %s2801_s27, 384, %s2799_s12, %s2805_s15, %s2174_s17, %s2174_s17, %s2175_s18  }
 0x411   : > { %s3062_s19 = sld [smem:[#allocation44_spill]]  ;;  %s1112_s25 = sshll.u32 %s2755_s2, 4  ;;  %s2842_s25 = int_to_ptr.vmem [resolvable:$true] %s1112_s25 }
 0x412   : > { %s3063_s12 = sld [smem:[#allocation52_spill]]  ;;  %s2847_s30 = scalar_lea.sflag [#allocation18], %s489_s10 }
 0x413   : > { %s1981_s23 = scalar_lea.vmem %s2842_s25, 384  ;;  %s2176_s6 = smov [#allocation17]  }
 0x414   : > { %s1523_s28 = smul.u32 6, %s3061_s11  ;;  %p1982_p4 = scmp.ne.s32.totalorder %s2842_s25, %s1981_s23 }
 0x415   : > { %s1985_s21 = sshll.u32 %s2176_s6, 4  ;;  %s1986_s21 = int_to_ptr.vmem [resolvable:$false] %s1985_s21 }
 0x416   : > { %s1109_s14 = sadd.s32 %s1523_s28, %s1103_s8  ;;  %s1987_s11 = scalar_lea.vmem %s1986_s21, 768 }
 0x417   : > { %s1388_s7 = sshll.u32 %s1109_s14, 7  ;;  %p3065_p13 = scmp.ne.s32.totalorder %s3062_s19, 0 }
 0x418   : > { %s3064_s3 = smov %s3063_s12  ;;  %s2840_s15 = scalar_lea.hbm %s3063_s12, %s1388_s7 }
 0x419   : > { %p1983_p1 = pnand %p1982_p4, %p3065_p13  ;;  %p1988_p8 = scmp.lt.s32.totalorder %s2842_s25, %s1986_s21 }
 0x41a   : > { %p1989_p0 = scmp.lt.s32.totalorder %s1987_s11, %s1981_s23 }
 0x41b   : > { %p1984_p5 = pneg %p1983_p1 }
 0x41c   : > { %p1990_p12 = por %p1989_p0, %p1988_p8 }
 0x41e   : > { %p1991_p11 = pnand %p1990_p12, %p1984_p5 }
 0x4cc   : > { %v1050_v62 = vpop.f32.mrb[0].mxu1 }
 0x4cd   : > { %v1067_v63 = vadd.f32 %v1064_v61, %v1050_v62  ;;  %v1489_v0 = vpop.f32.mrb[1].mxu1 }
 0x4cf   : > { %1070 = vst [vmem:[%s2755_s2] sm:$0xff] %v1067_v63 }
 0x4d0   : > { %v1055_v2 = vpop.f32.mrb[2].mxu1 }
 0x4d1   : > { %v1068_v3 = vadd.f32 %v1065_v1, %v1055_v2  ;;  %v1492_v4 = vpop.f32.mrb[3].mxu1 }
 0x4d3   : > { %1071 = vst [vmem:[%s2755_s2 + $0x8] sm:$0xff] %v1068_v3 }
 0x4d4   : > { %v1060_v6 = vpop.f32.mrb[4].mxu1 }
 0x4d5   : > { %v1069_v7 = vadd.f32 %v1066_v5, %v1060_v6  ;;  %v1495_v8 = vpop.f32.mrb[5].mxu1 }
 0x4d7   : > { %1072 = vst [vmem:[%s2755_s2 + $0x10] sm:$0xff] %v1069_v7 }
 0x4d8   : > { %1994 = shalt.err (!%p1991_p11)
}
 0x4d9   : > { %s1995_s10 = scalar_lea.hbm %s2840_s15, 384  ;;  %s1999_s28 = scalar_lea.hbm %s3064_s3, 1536 }
 0x4da   : > { %p1996_p3 = scmp.ne.s32.totalorder %s2840_s15, %s1995_s10  ;;  %p2000_p9 = scmp.lt.u32.totalorder %s2840_s15, %s3064_s3 }
 0x4db   : > { %p2001_p6 = scmp.lt.u32.totalorder %s1999_s28, %s1995_s10  ;;  %p2003_p4 = scmp.lt.u32.totalorder %s1995_s10, %s2840_s15 }
 0x4dc   : > { %p1997_p10 = pnand %p1996_p3, %p3065_p13 }
 0x4dd   : > { %p2002_p7 = por %p2001_p6, %p2000_p9 }
 0x4de   : > { %p1998_p2 = pneg %p1997_p10 }
 0x4df   : > { %p2004_p1 = por %p2003_p4, %p2002_p7 }
 0x4e1   : > { %p2005_p5 = pnand %p2004_p1, %p1998_p2 }
 0x4e3   : > { %2008 = shalt.err (!%p2005_p5)
}
 0x4e4   : > { %1549 = dma.vmem_to_hbm [thread:$0]  (%p3065_p13), %s2842_s25, 384, %s2840_s15, %s2847_s30, %s2174_s17, %s2174_s17, %s2175_s18  }
 0x4e5 PF: > { %s3066_s9 = sld [smem:[#allocation33_spill]]  ;;  %s3067_s27 = sld [smem:[#allocation42_spill]] }
 0x4e6   : > { %p1594_p8 = scmp.ge.s32.totalorder %s2155_s22, 2 }
 0x4eb   : > { %s1127_s12 = sand.u32 1, %s3066_s9   ;;  %p3068_p0 = scmp.ne.s32.totalorder %s3067_s27, 0 }
 0x4ec   : > { %s1128_s23 = scalar_lea.sflag [#allocation5], %s1127_s12 }
 0x4ed   : > { %p1579_p12 = pnand %p1594_p8, %p3068_p0 }
 0x4ef   : > { %2094 = dma.done.wait (!%p1579_p12), %s1128_s23, 384  }
 0x4f0   : > { %2096 = vsyncadd (!%p1579_p12), %s1128_s23, 4294966912  ;;  %s3069_s6 = sld [smem:[#allocation31_spill]]  ;;  %s3070_s19 = sld [smem:[#allocation45_spill]] }
 0x4f6   : > { %s1136_s21 = sand.u32 1, %s3069_s6   ;;  %p3071_p11 = scmp.ne.s32.totalorder %s3070_s19, 0 }
 0x4f7   : > { %s1137_s11 = scalar_lea.sflag [#allocation18], %s1136_s21 }
 0x4f8   : > { %p1582_p3 = pnand %p1594_p8, %p3071_p11 }
 0x4fa   : > { %2098 = dma.done.wait (!%p1582_p3), %s1137_s11, 384  }
 0x4fb   : > { %2100 = vsyncadd (!%p1582_p3), %s1137_s11, 4294966912  ;;  %s34_s22 = sadd.s32 1, %s2155_s22   ;;  %s3073_s30 = sld [smem:[#allocation29_spill]] }
 0x4fc   : > { %p2882_p13 = scmp.ge.s32.totalorder %s34_s22, 6   ;;  %s3074_s10 = sld [smem:[#allocation30_spill]] }
 0x4fd   : > { %s3075_s18 = sld [smem:[#allocation32_spill]]  ;;  %s3076_s14 = sld [smem:[#allocation43_spill]] }
 0x4fe   : > { %s3077_s25 = sld [smem:[#allocation34_spill]]  ;;  %s3078_s2 = sld [smem:[#allocation41_spill]] }
 0x4ff   : > { %s3079_s19 = sld [smem:[#allocation37_spill]]  ;;  %s3080_s8 = sld [smem:[#allocation39_spill]] }
 0x500   : > { %s3081_s21 = sld [smem:[#allocation40_spill]]  ;;  %s3083_s11 = smov %s2619_s24 }
 0x501   : > { %s3084_s12 = smov %s2119_s13  ;;  %s3086_s15 = smov %s2131_s16 }
 0x502   :  { %33 = sbr.rel (!%p2882_p13) target bundleno = 24 (0x18), region = 172 }
 0x503   : > { %s3085_s13 = smov %s3075_s18  ;;  %s3089_s18 = smov %s2147_s20 }
 0x504   : > { %s3087_s16 = smov %s3077_s25  ;;  %s3088_s17 = smov %s3078_s2 }
 0x505   : > { %s3090_s20 = smov %s3080_s8 }
 0x509   :  { %1142 = vsyncpa [#allocation4], 1 }
 0x50a   :  { %1144 = vsyncpa [#allocation4 + $0x1], 1 }
 0x50b   :  { %1145 = vsyncpa [#allocation7], 1 }
 0x50c   :  { %1147 = vsyncpa [#allocation7 + $0x1], 1 }
 0x50d   :  { %1148 = vsyncpa [#allocation10], 1 }
 0x50e   :  { %1149 = vsyncpa [#allocation13], 1 }
 0x50f   :  { %1150 = vsyncpa [#allocation5], 1 }
 0x510   :  { %1152 = vsyncpa [#allocation5 + $0x1], 1 }
 0x511   :  { %1153 = vsyncpa [#allocation18], 1 }
 0x512   :  { %1155 = vsyncpa [#allocation18 + $0x1], 1 }

</bundles_post_ra>
